<compile_context>
chip_gen: v6e
topology: v6e:2x2x1
jax: 0.10.0
libtpu: 0.0.40
codegen_flags: <defaults>
</compile_context>

<pallas_src>
import jax
import jax.numpy as jnp
from jax.experimental import pallas as pl
from jax.experimental.pallas import tpu as pltpu


# A (256, 1024) f32 tile is 1 MiB; 3 mel inputs x 2 pipeline buffers = 6 MiB
# plus a 32 KiB resident accumulator -- well inside every generation's scoped
# VMEM default (16 MiB v5e, 32 MiB v6e/v7x).
_TR_MAX = 256    # sublane axis (rows = B * n_mels), multiple of 8
_TC_MAX = 1024   # lane axis (time), multiple of 128


def _round_up(x: int, m: int) -> int:
    return ((x + m - 1) // m) * m


def _make_mel_mse_kernel(r: int, c: int, tr: int, tc: int):
    """Kernel factory: closes over static shape info so edge masking is only
    emitted when the array is actually ragged w.r.t. the tile."""
    need_row_mask = (r % tr) != 0
    need_col_mask = (c % tc) != 0

    def kernel(mel_out_ref, mel_post_ref, mel_tgt_ref, out_ref):
        i = pl.program_id(0)
        j = pl.program_id(1)

        @pl.when(j == 0)
        def _init():
            out_ref[...] = jnp.zeros_like(out_ref)

        tgt = mel_tgt_ref[...].astype(jnp.float32)
        d1 = mel_out_ref[...].astype(jnp.float32) - tgt
        d2 = mel_post_ref[...].astype(jnp.float32) - tgt
        e = d1 * d1 + d2 * d2                      # (TR, TC)

        # Zero out contributions from out-of-bounds (ragged-edge) positions.
        # jnp.where is a select, so garbage (even NaN/Inf) in the unread part
        # of a boundary block cannot leak into the sum.  These few VPU ops are
        # fully hidden under the HBM-bound loads.
        if need_row_mask or need_col_mask:
            mask = None
            if need_row_mask:
                rows = jax.lax.broadcasted_iota(jnp.int32, (tr, tc), 0)
                mask = (i * tr + rows) < r
            if need_col_mask:
                cols = jax.lax.broadcasted_iota(jnp.int32, (tr, tc), 1)
                cmask = (j * tc + cols) < c
                mask = cmask if mask is None else (mask & cmask)
            e = jnp.where(mask, e, jnp.float32(0.0))

        # (TR, TC) -> (TR//8, 8, TC): splits the sublane axis on vreg
        # boundaries (layout-preserving); the axis-0 sum is plain vreg-wise
        # VPU adds into the resident (8, TC) accumulator.  The final
        # lane/sublane collapse is deferred to the wrapper epilogue.
        out_ref[...] += jnp.sum(e.reshape(tr // 8, 8, tc), axis=0)

    return kernel


def _gate_bce_kernel(gate_out_ref, gate_tgt_ref, out_ref):
    """BCEWithLogitsLoss (mean), numerically stable form matching PyTorch."""
    x = gate_out_ref[...].astype(jnp.float32)
    y = gate_tgt_ref[...].astype(jnp.float32)
    bce = jnp.maximum(x, 0.0) - x * y + jnp.log1p(jnp.exp(-jnp.abs(x)))
    out_ref[0, 0] = jnp.sum(bce) / jnp.float32(x.size)


def tacotron2_loss(mel_out, mel_out_postnet, gate_out, mel_target, gate_target,
                   *, tr_max: int = _TR_MAX, tc_max: int = _TC_MAX):
    """Pallas-backed Tacotron2 loss. Returns a scalar float32."""
    assert mel_out.shape == mel_target.shape == mel_out_postnet.shape
    n_mel_true = mel_out.size                      # true element count

    # (B, n_mels, T) -> (B*n_mels, T): contiguous, time stays on the lane axis.
    r = 1
    for d in mel_out.shape[:-1]:
        r *= d
    c = mel_out.shape[-1]
    mo = mel_out.reshape(r, c)
    mp = mel_out_postnet.reshape(r, c)
    mt = mel_target.reshape(r, c)

    # Tile sizes: (8,128)-aligned, capped; no HBM pre-padding -- ragged edges
    # are masked inside the kernel.
    tr = min(tr_max, _round_up(r, 8))
    tc = min(tc_max, _round_up(c, 128))
    n_rb = pl.cdiv(r, tr)
    n_cb = pl.cdiv(c, tc)

    partials = pl.pallas_call(
        _make_mel_mse_kernel(r, c, tr, tc),
        out_shape=jax.ShapeDtypeStruct((n_rb * 8, tc), jnp.float32),
        grid=(n_rb, n_cb),
        in_specs=[
            pl.BlockSpec((tr, tc), lambda i, j: (i, j)),   # mel_out
            pl.BlockSpec((tr, tc), lambda i, j: (i, j)),   # mel_out_postnet
            pl.BlockSpec((tr, tc), lambda i, j: (i, j)),   # mel_target
        ],
        out_specs=pl.BlockSpec((8, tc), lambda i, j: (i, 0)),
        compiler_params=pltpu.CompilerParams(
            dimension_semantics=("parallel", "arbitrary")),
    )(mo, mp, mt)

    # Tiny (n_rb*8, tc) final collapse + scalar combine in plain JAX.
    mse = jnp.sum(partials) / jnp.float32(n_mel_true)

    # Gate BCE: flatten to a single lane-major row; full-array VMEM block.
    go = gate_out.reshape(1, -1)
    gt = gate_target.reshape(1, -1)
    bce = pl.pallas_call(
        _gate_bce_kernel,
        out_shape=jax.ShapeDtypeStruct((1, 1), jnp.float32),
        in_specs=[
            pl.BlockSpec(memory_space=pltpu.MemorySpace.VMEM),  # gate_out
            pl.BlockSpec(memory_space=pltpu.MemorySpace.VMEM),  # gate_target
        ],
        out_specs=pl.BlockSpec(memory_space=pltpu.MemorySpace.SMEM),
    )(go, gt)[0, 0]

    return mse + bce


def _reference_loss(mel_out, mel_out_postnet, gate_out, mel_target, gate_target):
    mse1 = jnp.mean((mel_out - mel_target) ** 2)
    mse2 = jnp.mean((mel_out_postnet - mel_target) ** 2)
    x = gate_out.reshape(-1, 1)
    y = gate_target.reshape(-1, 1)
    bce = jnp.mean(jnp.maximum(x, 0.0) - x * y + jnp.log1p(jnp.exp(-jnp.abs(x))))
    return mse1 + mse2 + bce


if __name__ == "__main__":
    key = jax.random.PRNGKey(0)
    # Small shapes consistent with Tacotron2 outputs; chosen so both the row
    # (20) and lane (200) ragged-edge masking paths are exercised.
    B, N_MELS, T = 2, 10, 200

    k1, k2, k3, k4, k5 = jax.random.split(key, 5)
    mel_target = jax.random.normal(k1, (B, N_MELS, T), dtype=jnp.float32)
    mel_out = jax.random.normal(k2, (B, N_MELS, T), dtype=jnp.float32)
    mel_out_postnet = jax.random.normal(k3, (B, N_MELS, T), dtype=jnp.float32)
    gate_out = jax.random.normal(k4, (B, T), dtype=jnp.float32)
    gate_target = (jax.random.uniform(k5, (B, T)) > 0.5).astype(jnp.float32)

    ref = _reference_loss(mel_out, mel_out_postnet, gate_out, mel_target, gate_target)

    # 1) Default tiles: single block, both masks active.
    loss = tacotron2_loss(mel_out, mel_out_postnet, gate_out, mel_target, gate_target)
    loss = jax.block_until_ready(loss)
    assert jnp.allclose(loss, ref, rtol=1e-5, atol=1e-5), (loss, ref)

    # 2) Tiny tiles: exercises the multi-block grid, the cross-column-block
    #    accumulator and the parallel row axis.
    loss_small = tacotron2_loss(mel_out, mel_out_postnet, gate_out,
                                mel_target, gate_target, tr_max=8, tc_max=128)
    loss_small = jax.block_until_ready(loss_small)
    assert jnp.allclose(loss_small, ref, rtol=1e-5, atol=1e-5), (loss_small, ref)

    print("KERNEL_OK")
</pallas_src>

<mosaic_0001>
module attributes {stable_mosaic.version = 11 : i64} {
  func.func @kernel(%arg0: i32, %arg1: i32, %arg2: memref<24x256xf32, #tpu.memory_space<vmem>>, %arg3: memref<24x256xf32, #tpu.memory_space<vmem>>, %arg4: memref<24x256xf32, #tpu.memory_space<vmem>>, %arg5: memref<8x256xf32, #tpu.memory_space<vmem>>) attributes {dimension_semantics = [#tpu.dimension_semantics<parallel>, #tpu.dimension_semantics<arbitrary>], iteration_bounds = array<i64: 1, 1>, scalar_prefetch = 0 : i64, scratch_operands = 0 : i64, tpu.core_type = #tpu.core_type<tc>, window_params = [{transform_indices = @transform_0, window_bounds = array<i64: 24, 256>}, {transform_indices = @transform_1, window_bounds = array<i64: 24, 256>}, {transform_indices = @transform_2, window_bounds = array<i64: 24, 256>}, {transform_indices = @transform_3, window_bounds = array<i64: 8, 256>}]} {
    %c0_i32 = arith.constant 0 : i32
    %0 = arith.cmpi eq, %arg1, %c0_i32 : i32
    %1 = arith.extui %0 : i1 to i32
    %c0_i32_0 = arith.constant 0 : i32
    %2 = arith.cmpi ne, %1, %c0_i32_0 : i32
    scf.if %2 {
      %cst_11 = arith.constant 0.000000e+00 : f32
      %31 = vector.broadcast %cst_11 : f32 to vector<8x256xf32>
      %c0_12 = arith.constant 0 : index
      %c0_13 = arith.constant 0 : index
      %32 = vector.load %arg5[%c0_12, %c0_13] : memref<8x256xf32, #tpu.memory_space<vmem>>, vector<8x256xf32>
      tpu.vector_store %arg5[%c0_12, %c0_13], %31 {strides = array<i32>} : memref<8x256xf32, #tpu.memory_space<vmem>>, vector<8x256xf32>,
    } else {
    }
    %c0 = arith.constant 0 : index
    %c0_1 = arith.constant 0 : index
    %3 = vector.load %arg4[%c0, %c0_1] : memref<24x256xf32, #tpu.memory_space<vmem>>, vector<24x256xf32>
    %c0_2 = arith.constant 0 : index
    %c0_3 = arith.constant 0 : index
    %4 = vector.load %arg2[%c0_2, %c0_3] : memref<24x256xf32, #tpu.memory_space<vmem>>, vector<24x256xf32>
    %5 = arith.subf %4, %3 : vector<24x256xf32>
    %c0_4 = arith.constant 0 : index
    %c0_5 = arith.constant 0 : index
    %6 = vector.load %arg3[%c0_4, %c0_5] : memref<24x256xf32, #tpu.memory_space<vmem>>, vector<24x256xf32>
    %7 = arith.subf %6, %3 : vector<24x256xf32>
    %8 = arith.mulf %5, %5 : vector<24x256xf32>
    %9 = arith.mulf %7, %7 : vector<24x256xf32>
    %10 = arith.addf %8, %9 : vector<24x256xf32>
    %11 = tpu.iota {dimensions = array<i32: 0>} : vector<24x256xi32>
    %c24_i32 = arith.constant 24 : i32
    %12 = arith.muli %arg0, %c24_i32 : i32
    %13 = vector.broadcast %12 : i32 to vector<24x256xi32>
    %14 = arith.addi %13, %11 : vector<24x256xi32>
    %c20_i32 = arith.constant 20 : i32
    %15 = vector.broadcast %c20_i32 : i32 to vector<24x256xi32>
    %16 = arith.cmpi slt, %14, %15 : vector<24x256xi32>
    %17 = tpu.iota {dimensions = array<i32: 1>} : vector<24x256xi32>
    %c256_i32 = arith.constant 256 : i32
    %18 = arith.muli %arg1, %c256_i32 : i32
    %19 = vector.broadcast %18 : i32 to vector<24x256xi32>
    %20 = arith.addi %19, %17 : vector<24x256xi32>
    %c200_i32 = arith.constant 200 : i32
    %21 = vector.broadcast %c200_i32 : i32 to vector<24x256xi32>
    %22 = arith.cmpi slt, %20, %21 : vector<24x256xi32>
    %23 = arith.andi %16, %22 : vector<24x256xi1>
    %cst = arith.constant 0.000000e+00 : f32
    %24 = vector.broadcast %cst : f32 to vector<24x256xf32>
    %25 = arith.select %23, %10, %24 : vector<24x256xi1>, vector<24x256xf32>
    %c0_6 = arith.constant 0 : index
    %c0_7 = arith.constant 0 : index
    %26 = vector.load %arg5[%c0_6, %c0_7] : memref<8x256xf32, #tpu.memory_space<vmem>>, vector<8x256xf32>
    %27 = vector.shape_cast %25 : vector<24x256xf32> to vector<3x8x256xf32>
    %cst_8 = arith.constant dense<0.000000e+00> : vector<8x256xf32>
    %28 = vector.multi_reduction <add>, %27, %cst_8 [0] : vector<3x8x256xf32> to vector<8x256xf32>
    %29 = arith.addf %26, %28 : vector<8x256xf32>
    %c0_9 = arith.constant 0 : index
    %c0_10 = arith.constant 0 : index
    %30 = vector.load %arg5[%c0_9, %c0_10] : memref<8x256xf32, #tpu.memory_space<vmem>>, vector<8x256xf32>
    tpu.vector_store %arg5[%c0_9, %c0_10], %29 {strides = array<i32>} : memref<8x256xf32, #tpu.memory_space<vmem>>, vector<8x256xf32>,
    return
  }
  func.func @transform_0(%arg0: i32, %arg1: i32) -> (i32, i32) {
    %c0_i32 = arith.constant 0 : i32
    return %arg0, %arg1 : i32, i32
  }
  func.func @transform_1(%arg0: i32, %arg1: i32) -> (i32, i32) {
    %c0_i32 = arith.constant 0 : i32
    return %arg0, %arg1 : i32, i32
  }
  func.func @transform_2(%arg0: i32, %arg1: i32) -> (i32, i32) {
    %c0_i32 = arith.constant 0 : i32
    return %arg0, %arg1 : i32, i32
  }
  func.func @transform_3(%arg0: i32, %arg1: i32) -> (i32, i32) {
    %c0_i32 = arith.constant 0 : i32
    %c0_i32_0 = arith.constant 0 : i32
    return %arg0, %c0_i32 : i32, i32
  }
}

</mosaic_0001>

<bundles_post_ra>
// kernel: tpu_custom_call.1
= control target key start
LH: loop header
LB: loop body
LE: loop exit
PB: predicated region body
PF: predicated region fallthrough
CT: control target
= control target key end

     0   :  { %8 = vsyncpa [#allocation3], 0  ;;  %s305_s0 = inlined_call_operand.hbm [shape: f32[20,200], index: 0, kind: input, shape index: {}]   ;;  %s306_s1 = inlined_call_operand.hbm [shape: f32[20,200], index: 1, kind: input, shape index: {}]   ;;  %s307_s2 = inlined_call_operand.hbm [shape: f32[20,200], index: 2, kind: input, shape index: {}]   ;;  %s308_s3 = inlined_call_operand.hbm [shape: f32[8,256], index: 3, kind: output, shape index: {}]  }
   0x1   :  { %9 = vsyncpa [#allocation6], 0 }
   0x2   :  { %10 = vsyncpa [#allocation4], 0  ;;  %s262_s12 = smov [#allocation5]   ;;  %s263_s14 = smov [#allocation2]  }
   0x3   :  { %s28_s13 = sshll.u32 %s262_s12, 4  ;;  %s16_s15 = sshll.u32 %s263_s14, 4  ;;  %s29_s13 = int_to_ptr.vmem [resolvable:$true] %s28_s13  ;;  %s17_s15 = int_to_ptr.vmem [resolvable:$true] %s16_s15 }
   0x4   :  { %s184_s16 = scalar_lea.vmem %s29_s13, 768  ;;  %p189_p1 = scmp.lt.s32.totalorder %s29_s13, %s29_s13 }
   0x5   :  { %p185_p0 = scmp.ne.s32.totalorder %s29_s13, %s184_s16  ;;  %p190_p2 = scmp.lt.s32.totalorder %s184_s16, %s184_s16 }
   0x7   :  { %p191_p3 = por %p190_p2, %p189_p1 }
   0x9   :  { %p192_p4 = pnand %p191_p3, %p185_p0 }
   0xb   :  { %195 = shalt.err (!%p192_p4)
}
   0xc   :  { %s264_s17 = smov 256   ;;  %s265_s18 = smov 16  }
   0xd   :  { %34 = dma.hbm_to_vmem [thread:$0]  %s306_s1, 768, %s29_s13, [#allocation6], %s264_s17, %s264_s17, %s265_s18  }
   0xe   :  { %s204_s21 = scalar_lea.vmem %s17_s15, 768  ;;  %p209_p6 = scmp.lt.s32.totalorder %s17_s15, %s17_s15 }
   0xf   :  { %p205_p5 = scmp.ne.s32.totalorder %s17_s15, %s204_s21  ;;  %p210_p7 = scmp.lt.s32.totalorder %s204_s21, %s204_s21 }
  0x11   :  { %p211_p8 = por %p210_p7, %p209_p6 }
  0x13   :  { %p212_p9 = pnand %p211_p8, %p205_p5 }
  0x15   :  { %215 = shalt.err (!%p212_p9)
}
  0x16   :  { %22 = dma.hbm_to_vmem [thread:$0]  %s305_s0, 768, %s17_s15, [#allocation3], %s264_s17, %s264_s17, %s265_s18  }
  0x17   :  { %s266_s24 = smov [#allocation7]  }
  0x18   :  { %s40_s25 = sshll.u32 %s266_s24, 4  ;;  %s41_s25 = int_to_ptr.vmem [resolvable:$true] %s40_s25 }
  0x19   :  { %s224_s26 = scalar_lea.vmem %s41_s25, 768  ;;  %p229_p11 = scmp.lt.s32.totalorder %s41_s25, %s41_s25 }
  0x1a   :  { %p225_p10 = scmp.ne.s32.totalorder %s41_s25, %s224_s26  ;;  %p230_p12 = scmp.lt.s32.totalorder %s224_s26, %s224_s26 }
  0x1c   :  { %p231_p13 = por %p230_p12, %p229_p11 }
  0x1e   :  { %p232_p0 = pnand %p231_p13, %p225_p10 }
  0x20   :  { %235 = shalt.err (!%p232_p0)
}
  0x21   :  { %46 = dma.hbm_to_vmem [thread:$0]  %s307_s2, 768, %s41_s25, [#allocation6], %s264_s17, %s264_s17, %s265_s18  }
  0x22   :  { %256 = dma.done.wait [#allocation3], 768  }
  0x23   :  { %257 = vsyncadd [#allocation3], 4294966528 }
  0x24   :  { %258 = dma.done.wait [#allocation6], 1536  }
  0x25   :  { %259 = vsyncadd [#allocation6], 4294965760  ;;  %v110_v0 = vlaneseq  ;;  %v62_v4 = vld [vmem:[#allocation7] sm:$0xff]  ;;  %v64_v5 = vld [vmem:[#allocation7 + $0x10] sm:$0xff]  ;;  %s267_s0 = smov [#allocation8]  }
  0x26   :  { %v66_v6 = vld [vmem:[#allocation7 + $0x20] sm:$0xff]  ;;  %v70_v9 = vld [vmem:[#allocation2 + $0x10] sm:$0xff]  ;;  %v63_v20 = vld [vmem:[#allocation7 + $0x8] sm:$0xff]  ;;  %s159_s2 = sshll.u32 %s267_s0, 4  ;;  %s160_s2 = int_to_ptr.vmem [resolvable:$true] %s159_s2 }
  0x27   :  { %v111_v1 = vshrl.u32 %v110_v0, 7  ;;  %v123_v2 = vand.u32 127, %v110_v0  ;;  %v68_v8 = vld [vmem:[#allocation2] sm:$0xff]  ;;  %v76_v12 = vsub.f32 %v70_v9, %v64_v5  ;;  %v80_v14 = vld [vmem:[#allocation5] sm:$0xff]  ;;  %v65_v21 = vld [vmem:[#allocation7 + $0x18] sm:$0xff]  ;;  %s236_s28 = scalar_lea.vmem %s160_s2, 256  ;;  %p241_p2 = scmp.lt.s32.totalorder %s160_s2, %s160_s2 }
  0x28   :  { %v72_v10 = vld [vmem:[#allocation2 + $0x20] sm:$0xff]  ;;  %v74_v11 = vsub.f32 %v68_v8, %v62_v4  ;;  %v84_v16 = vld [vmem:[#allocation5 + $0x20] sm:$0xff]  ;;  %v86_v17 = vsub.f32 %v80_v14, %v62_v4  ;;  %v67_v22 = vld [vmem:[#allocation7 + $0x28] sm:$0xff]  ;;  %p237_p1 = scmp.ne.s32.totalorder %s160_s2, %s236_s28  ;;  %p242_p3 = scmp.lt.s32.totalorder %s236_s28, %s236_s28 }
  0x29   :  { %v113_v3 = vadd.s32 16, %v111_v1  ;;  %v124_v7 = vadd.s32 128, %v123_v2  ;;  %v78_v13 = vsub.f32 %v72_v10, %v66_v6  ;;  %v82_v15 = vld [vmem:[#allocation5 + $0x10] sm:$0xff]  ;;  %v90_v19 = vsub.f32 %v84_v16, %v66_v6  ;;  %v69_v26 = vld [vmem:[#allocation2 + $0x8] sm:$0xff]  ;;  %v71_v27 = vld [vmem:[#allocation2 + $0x18] sm:$0xff] }
  0x2a   :  { %v88_v18 = vsub.f32 %v82_v15, %v64_v5  ;;  %v92_v23 = vmul.f32 %v74_v11, %v74_v11  ;;  %v94_v24 = vmul.f32 %v76_v12, %v76_v12  ;;  %v73_v28 = vld [vmem:[#allocation2 + $0x28] sm:$0xff]  ;;  %v98_v29 = vmul.f32 %v86_v17, %v86_v17  ;;  %v81_v33 = vld [vmem:[#allocation5 + $0x8] sm:$0xff]  ;;  %p243_p4 = por %p242_p3, %p241_p2 }
  0x2b   :  { %vm121_vm0 = vcmp.lt.s32.totalorder %v113_v3, 20  ;;  %v96_v25 = vmul.f32 %v78_v13, %v78_v13  ;;  %vm130_vm1 = vcmp.lt.s32.totalorder %v124_v7, 200  ;;  %v102_v31 = vmul.f32 %v90_v19, %v90_v19  ;;  %v83_v34 = vld [vmem:[#allocation5 + $0x18] sm:$0xff]  ;;  %v85_v35 = vld [vmem:[#allocation5 + $0x28] sm:$0xff] }
  0x2c   :  { %v100_v30 = vmul.f32 %v88_v18, %v88_v18  ;;  %v75_v32 = vsub.f32 %v69_v26, %v63_v20  ;;  %v77_v36 = vsub.f32 %v71_v27, %v65_v21  ;;  %v79_v37 = vsub.f32 %v73_v28, %v67_v22  ;;  %vm136_vm2 = vmand %vm121_vm0, %vm130_vm1  ;;  %p244_p5 = pnand %p243_p4, %p237_p1 }
  0x2d   :  { %v87_v38 = vsub.f32 %v81_v33, %v63_v20  ;;  %v89_v39 = vsub.f32 %v83_v34, %v65_v21  ;;  %v104_v40 = vadd.f32 %v98_v29, %v92_v23  ;;  %v108_v42 = vadd.f32 %v102_v31, %v96_v25 }
  0x2e   :  { %v106_v41 = vadd.f32 %v100_v30, %v94_v24  ;;  %v91_v43 = vsub.f32 %v85_v35, %v67_v22  ;;  %v93_v44 = vmul.f32 %v75_v32, %v75_v32  ;;  %v95_v45 = vmul.f32 %v77_v36, %v77_v36 }
  0x2f   :  { %v97_v46 = vmul.f32 %v79_v37, %v79_v37  ;;  %v99_v47 = vmul.f32 %v87_v38, %v87_v38  ;;  %v141_v48 = vsel %vm121_vm0, %v108_v42, 0.0  ;;  %v101_v50 = vmul.f32 %v89_v39, %v89_v39 }
  0x30   :  { %v145_v49 = vadd.f32 %v106_v41, %v104_v40  ;;  %v103_v51 = vmul.f32 %v91_v43, %v91_v43 }
  0x31   :  { %v105_v52 = vadd.f32 %v99_v47, %v93_v44  ;;  %v107_v54 = vadd.f32 %v101_v50, %v95_v45 }
  0x32   :  { %v146_v53 = vadd.f32 %v145_v49, %v141_v48  ;;  %v109_v55 = vadd.f32 %v103_v51, %v97_v46 }
  0x33   :  { %v138_v56 = vsel %vm130_vm1, %v105_v52, 0.0  ;;  %v140_v57 = vsel %vm130_vm1, %v107_v54, 0.0 }
  0x34   :  { %v142_v58 = vsel %vm136_vm2, %v109_v55, 0.0  ;;  %v147_v59 = vadd.f32 %v140_v57, %v138_v56  ;;  %151 = vst [vmem:[#allocation8] sm:$0xff] %v146_v53 }
  0x36   :  { %v148_v60 = vadd.f32 %v147_v59, %v142_v58 }
  0x38   :  { %152 = vst [vmem:[#allocation8 + $0x8] sm:$0xff] %v148_v60 }
  0x39   :  { %247 = shalt.err (!%p244_p5)
}
  0x3a   :  { %162 = dma.vmem_to_hbm [thread:$0]  %s160_s2, 256, %s308_s3, [#allocation4]  }
  0x3b   :  { %260 = dma.done.wait [#allocation4], 256  }
  0x3c   :  { %261 = vsyncadd [#allocation4], 4294967040 }
  0x3d   :  { %166 = vsyncpa [#allocation3], 1 }
  0x3e   :  { %167 = vsyncpa [#allocation6], 1 }
  0x3f   :  { %168 = vsyncpa [#allocation4], 1 }

</bundles_post_ra>
